<compile_context>
chip_gen: v5e
topology: v5e:2x2
jax: 0.10.0
libtpu: 0.0.40
codegen_flags: <defaults>
</compile_context>

<pallas_src>
import functools

import jax
import jax.numpy as jnp
from jax.experimental import pallas as pl
from jax.experimental.pallas import tpu as pltpu

# ---- head configuration (CenterPoint-style) --------------------------------
NUM_CLS = 3                       # hm channels
NUM_BOX = 8                       # center(2) + center_z(1) + dim(3) + rot(2)
NUM_IOU = 1
C_OUT = NUM_CLS + NUM_BOX + NUM_IOU   # 12 fused head channels

# Kernel-internal channel order puts the 8 box channels on sublanes 0..7
# (vreg-aligned slice), cls on 8..10, iou on 11.
# _PERM maps logical [cls(3), box(8), iou(1)] -> kernel order [box, cls, iou].
_PERM = tuple(range(NUM_CLS, NUM_CLS + NUM_BOX)) + tuple(range(NUM_CLS)) + (NUM_CLS + NUM_BOX,)


def _round_up(x, m):
    return (x + m - 1) // m * m


# ---- Pallas kernel: fused 1x1-conv heads, pixels on lanes -------------------
def _head_kernel(x_ref, w_ref, b_ref, box_ref, cls_ref, iou_ref):
    # x_ref: (C_in, T_PIX)  BEV slab in native NCHW layout (pixels on lanes)
    # w_ref: (C_OUT, C_in)  fused head weights in kernel order (resident)
    # b_ref: (C_OUT, 1)     fused head bias in kernel order (resident)
    x = x_ref[...].astype(w_ref.dtype)            # bf16/int inputs upcast on VPU
    y = jnp.dot(w_ref[...], x,
                preferred_element_type=jnp.float32,
                precision=jax.lax.Precision.HIGHEST)
    y = y + b_ref[...]                            # (C_OUT, T_PIX)
    # sublane-aligned static slices feed the three lane-dense head outputs
    box_ref[...] = y[:NUM_BOX, :].astype(box_ref.dtype)
    cls_ref[...] = jax.nn.sigmoid(y[NUM_BOX:NUM_BOX + NUM_CLS, :]).astype(cls_ref.dtype)
    iou_ref[...] = y[NUM_BOX + NUM_CLS:, :].astype(iou_ref.dtype)


def _pick_tpix(hw, c_in, n, in_itemsize, tpix_request, vmem_buf_budget):
    """Pick a lane-dense pixel tile bounded by the VMEM buffer budget."""
    out_rows = _round_up(NUM_BOX, 8) + _round_up(NUM_CLS, 8) + _round_up(NUM_IOU, 8)
    # double-buffered input slab + double-buffered (sublane-padded) outputs
    per_pix = 2 * c_in * in_itemsize + 2 * out_rows * 4
    tpix = min(tpix_request, max(128, vmem_buf_budget // per_pix))
    tpix = max(128, (tpix // 128) * 128)
    tpix = min(tpix, _round_up(hw, 128))
    # v7x megacore: with a single batch element, ensure >= 2 pixel blocks so
    # both TensorCores have work (a single giant block halves effective HBM BW).
    if n == 1 and hw > 128:
        tpix = min(tpix, _round_up(pl.cdiv(hw, 2), 128))
    return tpix


@functools.partial(jax.jit, static_argnames=("tpix",))
def quant_model_forward(bev_map, w, b, *, tpix=16384):
    """bev_map: [N, C_in, H, W] (NCHW, matching the PyTorch input, f32 or bf16).

    w: [C_OUT, C_in] fused 1x1-conv head weight in logical [cls, box, iou] order,
    b: [C_OUT, 1]    fused bias in the same order.

    Returns (cls_preds, box_preds, iou_preds) in NCHW:
      cls_preds: [N, 3, H, W]  (sigmoid(hm))
      box_preds: [N, 8, H, W]  (cat([center, center_z, dim, rot], dim=1))
      iou_preds: [N, 1, H, W]
    """
    n, c_in, h, wdt = bev_map.shape
    hw = h * wdt
    in_itemsize = bev_map.dtype.itemsize

    # NCHW -> [N, C_in, H*W]: pure reshape, no data movement / transpose.
    x = bev_map.reshape(n, c_in, hw)

    # Permute fused params into the sublane-aligned kernel order [box, cls, iou].
    perm = jnp.asarray(_PERM)
    w_k = w[perm]
    b_k = b[perm]

    # Large lane-dense pixel tiles; budget-clamped, ragged tails via pl.cdiv.
    tpix = _pick_tpix(hw, c_in, n, in_itemsize, tpix, vmem_buf_budget=36 << 20)
    num_pix_blocks = pl.cdiv(hw, tpix)

    # Scoped-VMEM limit sized to the actual double-buffered block footprint.
    out_rows = _round_up(NUM_BOX, 8) + _round_up(NUM_CLS, 8) + _round_up(NUM_IOU, 8)
    buf_bytes = (2 * c_in * tpix * in_itemsize
                 + 2 * out_rows * tpix * 4
                 + 2 * (_round_up(C_OUT, 8) * _round_up(c_in, 128)
                        + _round_up(C_OUT, 8) * 128) * 4)
    vmem_limit = max(16 << 20, min(buf_bytes + (8 << 20), 48 << 20))

    cost = pl.CostEstimate(
        flops=2 * C_OUT * c_in * hw * n,
        transcendentals=NUM_CLS * hw * n,                 # sigmoid = 1 exp / elem
        bytes_accessed=n * hw * (c_in * in_itemsize + C_OUT * 4)
                       + C_OUT * (c_in + 1) * 4,
    )

    # TODO(synk): biggest remaining lever is avoiding the full BEV-map HBM
    # re-read entirely (allow_input_fusion with the q_model producer, or emit
    # this 12-channel projection in the producer's epilogue); the producer is
    # opaque here, so the kernel reads bev_map from HBM.
    box, cls, iou = pl.pallas_call(
        _head_kernel,
        out_shape=(
            jax.ShapeDtypeStruct((n, NUM_BOX, hw), jnp.float32),
            jax.ShapeDtypeStruct((n, NUM_CLS, hw), jnp.float32),
            jax.ShapeDtypeStruct((n, NUM_IOU, hw), jnp.float32),
        ),
        grid=(n, num_pix_blocks),
        in_specs=[
            # BEV slab: batch dim squeezed, full channel dim, tiled pixel dim
            pl.BlockSpec((None, c_in, tpix), lambda nb, pb: (nb, 0, pb)),
            # weights / bias: constant block -> fetched once, stays in VMEM
            pl.BlockSpec((C_OUT, c_in), lambda nb, pb: (0, 0)),
            pl.BlockSpec((C_OUT, 1), lambda nb, pb: (0, 0)),
        ],
        out_specs=(
            pl.BlockSpec((None, NUM_BOX, tpix), lambda nb, pb: (nb, 0, pb)),
            pl.BlockSpec((None, NUM_CLS, tpix), lambda nb, pb: (nb, 0, pb)),
            pl.BlockSpec((None, NUM_IOU, tpix), lambda nb, pb: (nb, 0, pb)),
        ),
        compiler_params=pltpu.CompilerParams(
            # both axes independent -> shards across 2 TCs on v7x megacore
            dimension_semantics=("parallel", "parallel"),
            vmem_limit_bytes=int(vmem_limit),
        ),
        cost_estimate=cost,
    )(x, w_k, b_k)

    # [N, C, H*W] -> [N, C, H, W]: free reshape, already in NCHW convention.
    cls_preds = cls.reshape(n, NUM_CLS, h, wdt)
    box_preds = box.reshape(n, NUM_BOX, h, wdt)
    iou_preds = iou.reshape(n, NUM_IOU, h, wdt)
    # TODO(synk): dense_head.forward_quant (IoU-rectified score fusion / box
    # decoding) and model.post_processing (class-specific NMS) are opaque
    # model-specific modules with no clean Pallas equivalent here.
    return cls_preds, box_preds, iou_preds


def _reference(bev_map, w, b):
    y = jnp.einsum("oc,nchw->nohw", w.astype(jnp.float32),
                   bev_map.astype(jnp.float32),
                   precision=jax.lax.Precision.HIGHEST)
    y = y + b[None, :, :, None]
    return (jax.nn.sigmoid(y[:, :NUM_CLS]),
            y[:, NUM_CLS:NUM_CLS + NUM_BOX],
            y[:, NUM_CLS + NUM_BOX:])


if __name__ == "__main__":
    key = jax.random.PRNGKey(0)
    k_x, k_w, k_b = jax.random.split(key, 3)

    # small, deterministic synthetic shapes
    N, C_IN, H, W = 2, 32, 16, 16
    bev_map = jax.random.normal(k_x, (N, C_IN, H, W), dtype=jnp.float32)

    # deterministic fused head params in logical [cls(3), box(8), iou(1)] order
    w = 0.05 * jax.random.normal(k_w, (C_OUT, C_IN), dtype=jnp.float32)
    b = 0.01 * jax.random.normal(k_b, (C_OUT, 1), dtype=jnp.float32)
    # standard CenterPoint hm bias init (-2.19) — deterministic
    b = b.at[:NUM_CLS, 0].set(-2.19)

    # ---- f32 path -----------------------------------------------------------
    cls_preds, box_preds, iou_preds = quant_model_forward(bev_map, w, b)
    jax.block_until_ready((cls_preds, box_preds, iou_preds))

    assert cls_preds.shape == (N, NUM_CLS, H, W)
    assert box_preds.shape == (N, NUM_BOX, H, W)
    assert iou_preds.shape == (N, NUM_IOU, H, W)

    cls_ref, box_ref, iou_ref = _reference(bev_map, w, b)
    assert jnp.allclose(cls_preds, cls_ref, atol=1e-4, rtol=1e-4)
    assert jnp.allclose(box_preds, box_ref, atol=1e-4, rtol=1e-4)
    assert jnp.allclose(iou_preds, iou_ref, atol=1e-4, rtol=1e-4)

    # ---- n == 1, ragged H*W (576 px, not a multiple of 128) ------------------
    N2, H2, W2 = 1, 24, 24
    bev2 = jax.random.normal(k_x, (N2, C_IN, H2, W2), dtype=jnp.float32)
    c2, bx2, io2 = quant_model_forward(bev2, w, b)
    jax.block_until_ready((c2, bx2, io2))
    c2r, bx2r, io2r = _reference(bev2, w, b)
    assert jnp.allclose(c2, c2r, atol=1e-4, rtol=1e-4)
    assert jnp.allclose(bx2, bx2r, atol=1e-4, rtol=1e-4)
    assert jnp.allclose(io2, io2r, atol=1e-4, rtol=1e-4)

    # ---- bf16 activations (quantized-upstream path): halves HBM read traffic -
    c3, b3, i3 = quant_model_forward(bev_map.astype(jnp.bfloat16), w, b)
    jax.block_until_ready((c3, b3, i3))
    assert jnp.all(jnp.isfinite(b3))
    assert jnp.allclose(c3, cls_preds, atol=2e-2, rtol=2e-2)
    assert jnp.allclose(b3, box_preds, atol=5e-2, rtol=5e-2)

    print("KERNEL_OK")
</pallas_src>

<mosaic_0001>
module attributes {stable_mosaic.version = 11 : i64} {
  func.func @_head_kernel(%arg0: i32, %arg1: i32, %arg2: memref<1x32x256xf32, #tpu.memory_space<vmem>>, %arg3: memref<12x32xf32, #tpu.memory_space<vmem>>, %arg4: memref<12x1xf32, #tpu.memory_space<vmem>>, %arg5: memref<1x8x256xf32, #tpu.memory_space<vmem>>, %arg6: memref<1x3x256xf32, #tpu.memory_space<vmem>>, %arg7: memref<1x1x256xf32, #tpu.memory_space<vmem>>) attributes {dimension_semantics = [#tpu.dimension_semantics<parallel>, #tpu.dimension_semantics<parallel>], iteration_bounds = array<i64: 2, 1>, scalar_prefetch = 0 : i64, scratch_operands = 0 : i64, tpu.core_type = #tpu.core_type<tc>, window_params = [{transform_indices = @transform_0, window_bounds = array<i64: 1, 32, 256>}, {pipeline_mode = #tpu.pipeline_mode<synchronous>, transform_indices = @transform_1, window_bounds = array<i64: 12, 32>}, {pipeline_mode = #tpu.pipeline_mode<synchronous>, transform_indices = @transform_2, window_bounds = array<i64: 12, 1>}, {transform_indices = @transform_3, window_bounds = array<i64: 1, 8, 256>}, {transform_indices = @transform_4, window_bounds = array<i64: 1, 3, 256>}, {transform_indices = @transform_5, window_bounds = array<i64: 1, 1, 256>}]} {
    %c0 = arith.constant 0 : index
    %c0_0 = arith.constant 0 : index
    %c0_1 = arith.constant 0 : index
    %0 = vector.load %arg2[%c0, %c0_0, %c0_1] : memref<1x32x256xf32, #tpu.memory_space<vmem>>, vector<1x32x256xf32>
    %1 = vector.shape_cast %0 : vector<1x32x256xf32> to vector<32x256xf32>
    %c0_2 = arith.constant 0 : index
    %c0_3 = arith.constant 0 : index
    %2 = vector.load %arg3[%c0_2, %c0_3] : memref<12x32xf32, #tpu.memory_space<vmem>>, vector<12x32xf32>
    %cst = arith.constant dense<0.000000e+00> : vector<12x256xf32>
    %3 = tpu.matmul %2, %1, %cst {dimension_numbers = #tpu.dot_dimension_numbers<[1], [0], [0], [1], [0, 0, 1, 1], [], []>, precision = #tpu.contract_precision<fp32>} : vector<12x32xf32>, vector<32x256xf32>, vector<12x256xf32> -> vector<12x256xf32>
    %c0_4 = arith.constant 0 : index
    %c0_5 = arith.constant 0 : index
    %4 = vector.load %arg4[%c0_4, %c0_5] : memref<12x1xf32, #tpu.memory_space<vmem>>, vector<12x1xf32>
    %5 = vector.broadcast %4 : vector<12x1xf32> to vector<12x256xf32>
    %6 = arith.addf %3, %5 : vector<12x256xf32>
    %7 = vector.extract_strided_slice %6 {offsets = [0, 0], sizes = [8, 256], strides = [1, 1]} : vector<12x256xf32> to vector<8x256xf32>
    %c0_6 = arith.constant 0 : index
    %c0_7 = arith.constant 0 : index
    %c0_8 = arith.constant 0 : index
    %8 = vector.load %arg5[%c0_6, %c0_7, %c0_8] : memref<1x8x256xf32, #tpu.memory_space<vmem>>, vector<1x8x256xf32>
    %9 = vector.shape_cast %8 : vector<1x8x256xf32> to vector<8x256xf32>
    %10 = vector.shape_cast %7 : vector<8x256xf32> to vector<1x8x256xf32>
    tpu.vector_store %arg5[%c0_6, %c0_7, %c0_8], %10 {strides = array<i32>} : memref<1x8x256xf32, #tpu.memory_space<vmem>>, vector<1x8x256xf32>,
    %11 = vector.extract_strided_slice %6 {offsets = [8, 0], sizes = [3, 256], strides = [1, 1]} : vector<12x256xf32> to vector<3x256xf32>
    %12 = arith.negf %11 : vector<3x256xf32>
    %13 = math.exp %12 : vector<3x256xf32>
    %cst_9 = arith.constant 1.000000e+00 : f32
    %14 = vector.broadcast %cst_9 : f32 to vector<3x256xf32>
    %15 = arith.addf %14, %13 : vector<3x256xf32>
    %16 = arith.divf %14, %15 : vector<3x256xf32>
    %c0_10 = arith.constant 0 : index
    %c0_11 = arith.constant 0 : index
    %c0_12 = arith.constant 0 : index
    %17 = vector.load %arg6[%c0_10, %c0_11, %c0_12] : memref<1x3x256xf32, #tpu.memory_space<vmem>>, vector<1x3x256xf32>
    %18 = vector.shape_cast %17 : vector<1x3x256xf32> to vector<3x256xf32>
    %19 = vector.shape_cast %16 : vector<3x256xf32> to vector<1x3x256xf32>
    tpu.vector_store %arg6[%c0_10, %c0_11, %c0_12], %19 {strides = array<i32>} : memref<1x3x256xf32, #tpu.memory_space<vmem>>, vector<1x3x256xf32>,
    %20 = vector.extract_strided_slice %6 {offsets = [11, 0], sizes = [1, 256], strides = [1, 1]} : vector<12x256xf32> to vector<1x256xf32>
    %c0_13 = arith.constant 0 : index
    %c0_14 = arith.constant 0 : index
    %c0_15 = arith.constant 0 : index
    %21 = vector.load %arg7[%c0_13, %c0_14, %c0_15] : memref<1x1x256xf32, #tpu.memory_space<vmem>>, vector<1x1x256xf32>
    %22 = vector.shape_cast %21 : vector<1x1x256xf32> to vector<1x256xf32>
    %23 = vector.shape_cast %20 : vector<1x256xf32> to vector<1x1x256xf32>
    tpu.vector_store %arg7[%c0_13, %c0_14, %c0_15], %23 {strides = array<i32>} : memref<1x1x256xf32, #tpu.memory_space<vmem>>, vector<1x1x256xf32>,
    return
  }
  func.func @transform_0(%arg0: i32, %arg1: i32) -> (i32, i32, i32) {
    %c0_i32 = arith.constant 0 : i32
    %c0_i32_0 = arith.constant 0 : i32
    return %arg0, %c0_i32, %arg1 : i32, i32, i32
  }
  func.func @transform_1(%arg0: i32, %arg1: i32) -> (i32, i32) {
    %c0_i32 = arith.constant 0 : i32
    %c0_i32_0 = arith.constant 0 : i32
    %c0_i32_1 = arith.constant 0 : i32
    return %c0_i32, %c0_i32_0 : i32, i32
  }
  func.func @transform_2(%arg0: i32, %arg1: i32) -> (i32, i32) {
    %c0_i32 = arith.constant 0 : i32
    %c0_i32_0 = arith.constant 0 : i32
    %c0_i32_1 = arith.constant 0 : i32
    return %c0_i32, %c0_i32_0 : i32, i32
  }
  func.func @transform_3(%arg0: i32, %arg1: i32) -> (i32, i32, i32) {
    %c0_i32 = arith.constant 0 : i32
    %c0_i32_0 = arith.constant 0 : i32
    return %arg0, %c0_i32, %arg1 : i32, i32, i32
  }
  func.func @transform_4(%arg0: i32, %arg1: i32) -> (i32, i32, i32) {
    %c0_i32 = arith.constant 0 : i32
    %c0_i32_0 = arith.constant 0 : i32
    return %arg0, %c0_i32, %arg1 : i32, i32, i32
  }
  func.func @transform_5(%arg0: i32, %arg1: i32) -> (i32, i32, i32) {
    %c0_i32 = arith.constant 0 : i32
    %c0_i32_0 = arith.constant 0 : i32
    return %arg0, %c0_i32, %arg1 : i32, i32, i32
  }
}

</mosaic_0001>

<bundles_post_ra>
// kernel: quant_model_forward.1
= control target key start
LH: loop header
LB: loop body
LE: loop exit
PB: predicated region body
PF: predicated region fallthrough
CT: control target
= control target key end

     0   :  { %s1118_s18 = smov 0   ;;  %s1120_s19 = smov 0   ;;  %s1298_s0 = inlined_call_operand.vmem [shape: f32[2,32,256], index: 0, kind: input, shape index: {}]   ;;  %s1299_s1 = inlined_call_operand.vmem [shape: f32[12,32], index: 1, kind: input, shape index: {}]   ;;  %s1300_s2 = inlined_call_operand.vmem [shape: f32[12,1], index: 2, kind: input, shape index: {}]   ;;  %s1301_s3 = inlined_call_operand.vmem [shape: f32[2,8,256], index: 3, kind: output, shape index: {0}]   ;;  %s1302_s4 = inlined_call_operand.vmem [shape: f32[2,3,256], index: 4, kind: output, shape index: {1}]   ;;  %s1303_s5 = inlined_call_operand.vmem [shape: f32[2,1,256], index: 5, kind: output, shape index: {2}]  }
   0x1   :  { %s1122_s20 = smov 0  }
   0x2 LB: > { %s28_s21 = sadd.s32 1, %s1081_s19  ;;  %p1014_p0 = scmp.ge.s32.totalorder %s1085_s20, 1  ;;  %s1085_s20 = sphi %s1122_s20, %s16_s20   ;;  %s1081_s19 = sphi %s1120_s19, %s1307_s19   ;;  %s1077_s18 = sphi %s1118_s18, %s1306_s18  }
   0x3   : > { %p30_p1 = scmp.ge.s32.totalorder %s28_s21, 2  ;;  %p217_p2 = scmp.lt.s32.totalorder %s1085_s20, 3 }
   0x5   : > { %s1309_s21 = smov (%p30_p1, %s28_s21), 0  ;;  %p218_p3 = pnand %p1014_p0, %p217_p2 }
   0x6   : > { %p271_p4 = scmp.lt.s32.totalorder (!%p218_p3), %s1077_s18, 1 }
   0x7   : > { %221 = sbr.rel (%p218_p3) target bundleno = 238 (0xee), region = 32 }
   0xc   : > { %v317_v0 = vld [vmem:[%s1299_s1] sm:$0xff]  ;;  %vm331_vm0 = vcmask 261120   ;;  %v318_v1 = vld [vmem:[%s1299_s1 + $0x8] sm:$0xf]  ;;  %v1087_v3 = vmov 0   ;;  %s1311_s18 = smov (!%p271_p4, %s1077_s18), 1 }
   0xd   : > { %v333_v2 = vsel %vm331_vm0, %v317_v0, 0  ;;  %1054 = vset.pattern.permute.xlu0 %v1087_v3  ;;  %v336_v4 = vsel %vm331_vm0, %v318_v1, 0  ;;  %v320_v5 = vld [vmem:[%s1300_s2 + $0x8] sm:$0xf]  ;;  %s1026_s28 = sshll.u32 %s1311_s18, 6  ;;  %v319_v9 = vld [vmem:[%s1300_s2] sm:$0xff] }
   0xe   : > { %v1147_v6 = vand.u32 4294901760, %v333_v2  ;;  %v1149_v7 = vand.u32 4294901760, %v336_v4  ;;  %328 = vperm.xlu0 %1054, %v320_v5   ;;  %s278_s6 = scalar_lea.vmem %s1298_s0, %s1026_s28  ;;  %s1027_s9 = sshll.u32 %s1311_s18, 4  ;;  %vm813_vm9 = vcmask 1043456  }
   0xf   : > { %v315_v10 = vld [vmem:[%s278_s6 + $0x30] sm:$0xff]  ;;  %v313_v11 = vld [vmem:[%s278_s6 + $0x20] sm:$0xff]  ;;  %v316_v19 = vld [vmem:[%s278_s6 + $0x38] sm:$0xff]  ;;  %s288_s12 = scalar_lea.vmem %s1301_s3, %s1027_s9  ;;  %s1021_s13 = sshll.u32 %s1311_s18, 1 }
  0x10   : > { %v1153_v8 = vsub.f32 %v333_v2, %v1147_v6  ;;  %v311_v12 = vld [vmem:[%s278_s6 + $0x10] sm:$0xff]  ;;  %v1165_v14 = vsub.f32 %v336_v4, %v1149_v7  ;;  %v1167_v15 = vand.u32 4294901760, %v315_v10  ;;  %v1169_v16 = vand.u32 4294901760, %v313_v11  ;;  %v309_v18 = vld [vmem:[%s278_s6] sm:$0xff]  ;;  %v314_v20 = vld [vmem:[%s278_s6 + $0x28] sm:$0xff]  ;;  %s307_s16 = scalar_lea.vmem %s1303_s5, %s1021_s13  ;;  %s1028_s17 = sshll.u32 %s1311_s18, 3 }
  0x11   : > { %v1171_v17 = vand.u32 4294901760, %v311_v12  ;;  %v1173_v21 = vand.u32 4294901760, %v309_v18  ;;  %v1177_v23 = vand.u32 4294901760, %v316_v19  ;;  %v1186_v27 = vand.u32 4294901760, %v314_v20  ;;  %v312_v28 = vld [vmem:[%s278_s6 + $0x18] sm:$0xff]  ;;  %v310_v29 = vld [vmem:[%s278_s6 + $0x8] sm:$0xff]  ;;  %s298_s24 = scalar_lea.vmem %s1302_s4, %s1028_s17 }
  0x12   : > { %v1162_v13 = vand.u32 4294901760, %v1153_v8  ;;  %351 = vmatpush.msra.mxu0 %v1167_v15  ;;  %v388_v24 = vsub.f32 %v315_v10, %v1167_v15  ;;  %v394_v25 = vsub.f32 %v313_v11, %v1169_v16  ;;  %468 = vmatpush.msra.mxu3 %v1167_v15  ;;  %v1197_v33 = vand.u32 4294901760, %v1165_v14 }
  0x13   : > { %v1184_v26 = vsub.f32 %v311_v12, %v1171_v17  ;;  %v1191_v31 = vsub.f32 %v309_v18, %v1173_v21  ;;  %v1194_v32 = vsub.f32 %v316_v19, %v1177_v23  ;;  %v1202_v37 = vsub.f32 %v314_v20, %v1186_v27 }
  0x14   : > { %v361_v22 = vsub.f32 %v1153_v8, %v1162_v13  ;;  %353 = vmatpush.msra.mxu0 %v1169_v16  ;;  %434 = vmatpush.msra.mxu2 %v388_v24  ;;  %v389_v34 = vand.u32 4294901760, %v388_v24  ;;  %v395_v35 = vand.u32 4294901760, %v394_v25  ;;  %v1207_v40 = vand.u32 4294901760, %v312_v28 }
  0x15   : > { %v401_v36 = vand.u32 4294901760, %v1184_v26  ;;  %470 = vmatpush.msra.mxu3 %v1169_v16  ;;  %v605_v38 = vand.u32 4294901760, %v1194_v32  ;;  %v407_v39 = vand.u32 4294901760, %v1191_v31  ;;  %v1209_v41 = vand.u32 4294901760, %v310_v29 }
  0x16   : > { %v1188_v30 = vand.u32 4294901760, %v361_v22  ;;  %323 = vperm.xlu0 %1054, %v319_v9   ;;  %355 = vmatpush.msra.mxu0 %v1171_v17  ;;  %v390_v42 = vsub.f32 %v388_v24, %v389_v34  ;;  %v396_v43 = vsub.f32 %v394_v25, %v395_v35  ;;  %v611_v45 = vand.u32 4294901760, %v1202_v37 }
  0x17   : > { %437 = vmatpush.msra.mxu2 %v394_v25  ;;  %v402_v44 = vsub.f32 %v1184_v26, %v401_v36  ;;  %472 = vmatpush.msra.mxu3 %v1171_v17  ;;  %v606_v46 = vsub.f32 %v1194_v32, %v605_v38  ;;  %v616_v47 = vsub.f32 %v312_v28, %v1207_v40 }
  0x18   : > { %v1218_v48 = vsub.f32 %v310_v29, %v1209_v41  ;;  %357 = vmatpush.msra.mxu0 %v1173_v21  ;;  %v391_v49 = vand.u32 4294901760, %v390_v42  ;;  %v397_v50 = vand.u32 4294901760, %v396_v43  ;;  %v408_v51 = vsub.f32 %v1191_v31, %v407_v39 }
  0x19   : > { %440 = vmatpush.msra.mxu2 %v1184_v26  ;;  %v612_v52 = vsub.f32 %v1202_v37, %v611_v45  ;;  %363 = vmatmul.f32.vlgmr.msra.gmra.mxu0 %v1188_v30  ;;  %v607_v53 = vand.u32 4294901760, %v606_v46  ;;  %v369_v54 = vsub.f32 %v1165_v14, %v1197_v33  ;;  %v617_v55 = vand.u32 4294901760, %v616_v47 }
  0x1a   : > { %474 = vmatpush.msra.mxu3 %v1173_v21  ;;  %392 = vmatpush.msra.mxu1 %v391_v49  ;;  %v403_v56 = vand.u32 4294901760, %v402_v44  ;;  %v623_v57 = vand.u32 4294901760, %v1218_v48  ;;  %v409_v59 = vand.u32 4294901760, %v408_v51 }
  0x1b   : > { %443 = vmatpush.msra.mxu2 %v1191_v31  ;;  %478 = vmatmul.f32.vlgmr.msra.gmra.mxu3 %v1162_v13  ;;  %v613_v58 = vand.u32 4294901760, %v612_v52  ;;  %v618_v60 = vsub.f32 %v616_v47, %v617_v55  ;;  %v370_v61 = vand.u32 4294901760, %v369_v54 }
  0x1c   : > { %446 = vmatmul.f32.vlgmr.msra.gmra.mxu2 %v1153_v8  ;;  %398 = vmatpush.msra.mxu1 %v397_v50  ;;  %v624_v62 = vsub.f32 %v1218_v48, %v623_v57 }
  0x1d   : > { %567 = vmatpush.msrb.mxu2 %v1177_v23  ;;  %503 = vmatpush.msrb.mxu0 %v389_v34  ;;  %v619_v63 = vand.u32 4294901760, %v618_v60 }
  0x1e   : > { %608 = vmatpush.msrb.mxu3 %v607_v53  ;;  %404 = vmatpush.msra.mxu1 %v403_v56  ;;  %v625_v0 = vand.u32 4294901760, %v624_v62 }
  0x1f   : > { %569 = vmatpush.msrb.mxu2 %v1186_v27  ;;  %507 = vmatpush.msrb.mxu0 %v395_v35 }
  0x20   : > { %614 = vmatpush.msrb.mxu3 %v613_v58  ;;  %410 = vmatpush.msra.mxu1 %v409_v59 }
  0x21   : > { %571 = vmatpush.msrb.mxu2 %v1207_v40  ;;  %371 = vmatmul.f32.gmra.mxu0 %v370_v61 }
  0x22   : > { %412 = vmatmul.f32.vlgmr.msra.gmra.mxu1 %v1147_v6  ;;  %511 = vmatpush.msrb.mxu0 %v401_v36 }
  0x23   : > { %538 = vmatpush.msrb.mxu1 %v1167_v15  ;;  %484 = vmatmul.f32.gmra.mxu3 %v1197_v33 }
  0x24   : > { %451 = vmatmul.f32.gmra.mxu2 %v1165_v14  ;;  %620 = vmatpush.msrb.mxu3 %v619_v63 }
  0x25   : > { %540 = vmatpush.msrb.mxu1 %v1169_v16  ;;  %515 = vmatpush.msrb.mxu0 %v407_v39 }
  0x26   : > { %573 = vmatpush.msrb.mxu2 %v1209_v41  ;;  %626 = vmatpush.msrb.mxu3 %v625_v0 }
  0x27   : > { %542 = vmatpush.msrb.mxu1 %v1171_v17  ;;  %650 = vmatpush.msra.mxu0 %v1194_v32 }
  0x28   : > { %719 = vmatpush.msra.mxu2 %v605_v38  ;;  %754 = vmatpush.msra.mxu3 %v1177_v23 }
  0x29   : > { %544 = vmatpush.msrb.mxu1 %v1173_v21  ;;  %517 = vmatmul.f32.vlgmr.msrb.gmra.mxu0 %v1147_v6 }
  0x2a   : > { %416 = vmatmul.f32.gmra.mxu1 %v1149_v7  ;;  %723 = vmatpush.msra.mxu2 %v611_v45 }
  0x2b   : > { %684 = vmatpush.msra.mxu1 %v1177_v23  ;;  %628 = vmatmul.f32.vlgmr.msrb.gmra.mxu3 %v1147_v6 }
  0x2c   : > { %579 = vmatmul.f32.vlgmr.msrb.gmra.mxu2 %v1188_v30  ;;  %653 = vmatpush.msra.mxu0 %v1202_v37 }
  0x2d   : > { %756 = vmatpush.msra.mxu3 %v1186_v27  ;;  %686 = vmatpush.msra.mxu1 %v1186_v27 }
  0x2e   : > { %727 = vmatpush.msra.mxu2 %v617_v55  ;;  %656 = vmatpush.msra.mxu0 %v616_v47  ;;  %v824_v55 = vlaneseq }
  0x2f   : > { %758 = vmatpush.msra.mxu3 %v1207_v40  ;;  %688 = vmatpush.msra.mxu1 %v1207_v40 }
  0x30   : > { %731 = vmatpush.msra.mxu2 %v623_v57  ;;  %659 = vmatpush.msra.mxu0 %v1218_v48  ;;  %vm826_vm1 = vcmp.lt.s32.totalorder %v824_v55, 256 }
  0x31   : > { %760 = vmatpush.msra.mxu3 %v1209_v41  ;;  %521 = vmatmul.f32.gmra.mxu0 %v1149_v7 }
  0x32   : > { %546 = vmatmul.f32.vlgmr.msrb.gmra.mxu1 %v1147_v6 }
  0x33   : > { %690 = vmatpush.msra.mxu1 %v1209_v41  ;;  %632 = vmatmul.f32.gmra.mxu3 %v1149_v7 }
  0x34   : > { %587 = vmatmul.f32.gmra.mxu2 %v370_v61 }
  0x39   : > { %662 = vmatmul.f32.vlgmr.msra.gmra.mxu0 %v1153_v8 }
  0x3a   : > { %550 = vmatmul.f32.gmra.mxu1 %v1149_v7 }
  0x3b   : > { %762 = vmatmul.f32.vlgmr.msra.gmra.mxu3 %v1147_v6 }
  0x3c   : > { %733 = vmatmul.f32.vlgmr.msra.gmra.mxu2 %v1147_v6 }
  0x41   : > { %667 = vmatmul.f32.gmra.mxu0 %v1165_v14 }
  0x42   : > { %694 = vmatmul.f32.vlgmr.msra.gmra.mxu1 %v1162_v13 }
  0x43   : > { %766 = vmatmul.f32.gmra.mxu3 %v1149_v7 }
  0x44   : > { %737 = vmatmul.f32.gmra.mxu2 %v1149_v7 }
  0x4a   : > { %700 = vmatmul.f32.gmra.mxu1 %v1197_v33 }
  0x80   : > { %v329_v1 = vpop.permute.xlu0 %328 }
  0x88   : > { %v324_v3 = vpop.permute.xlu0 %323 }
  0x96   : > { %v364_v2 = vpop.f32.mrf.mxu0 }
  0x97   : > { %v365_v8 = vadd.f32 %v364_v2, %v324_v3 }
  0x9e   : > { %v372_v4 = vpop.f32.mrf.mxu0  ;;  %v479_v10 = vpop.f32.mrf.mxu3 }
  0x9f   : > { %v413_v5 = vpop.f32.mrf.mxu1  ;;  %v447_v9 = vpop.f32.mrf.mxu2  ;;  %v373_v14 = vadd.f32 %v372_v4, %v329_v1 }
  0xa0   : > { %v414_v6 = vadd.f32 %v413_v5, %v365_v8 }
  0xa2   : > { %v448_v13 = vadd.f32 %v447_v9, %v414_v6 }
  0xa4   : > { %v480_v17 = vadd.f32 %v479_v10, %v448_v13 }
  0xa6   : > { %v518_v12 = vpop.f32.mrf.mxu0  ;;  %v485_v16 = vpop.f32.mrf.mxu3 }
  0xa7   : > { %v417_v11 = vpop.f32.mrf.mxu1  ;;  %v452_v15 = vpop.f32.mrf.mxu2  ;;  %v519_v18 = vadd.f32 %v518_v12, %v480_v17 }
  0xa8   : > { %v418_v7 = vadd.f32 %v417_v11, %v373_v14 }
  0xaa   : > { %v453_v21 = vadd.f32 %v452_v15, %v418_v7 }
  0xac   : > { %v486_v25 = vadd.f32 %v485_v16, %v453_v21 }
  0xae   : > { %v522_v19 = vpop.f32.mrf.mxu0  ;;  %v629_v24 = vpop.f32.mrf.mxu3 }
  0xaf   : > { %v547_v20 = vpop.f32.mrf.mxu1  ;;  %v580_v23 = vpop.f32.mrf.mxu2  ;;  %v523_v26 = vadd.f32 %v522_v19, %v486_v25 }
  0xb0   : > { %v548_v22 = vadd.f32 %v547_v20, %v519_v18  ;;  %v581_v28 = vadd.f32 %v580_v23, %v324_v3 }
  0xb2   : > { %770 = vst [vmem:[%s288_s12] sm:$0xff] %v548_v22  ;;  %v630_v33 = vadd.f32 %v629_v24, %v581_v28 }
  0xb6   : > { %v633_v31 = vpop.f32.mrf.mxu3  ;;  %v663_v32 = vpop.f32.mrf.mxu0 }
  0xb7   : > { %v551_v27 = vpop.f32.mrf.mxu1  ;;  %v588_v30 = vpop.f32.mrf.mxu2  ;;  %v664_v35 = vadd.f32 %v663_v32, %v630_v33 }
  0xb8   : > { %v552_v29 = vadd.f32 %v551_v27, %v523_v26  ;;  %v589_v37 = vadd.f32 %v588_v30, %v329_v1 }
  0xba   : > { %819 = vst [vmem:[#allocation1] sm:$0xff] %v552_v29  ;;  %v1022_v34 = vmul.f32 -1.442695, %v552_v29  ;;  %v634_v43 = vadd.f32 %v633_v31, %v589_v37 }
  0xbc   : > { %1055 = vpow2.f32 %v1022_v34 }
  0xbe   : > { %v763_v40 = vpop.f32.mrf.mxu3  ;;  %v668_v42 = vpop.f32.mrf.mxu0 }
  0xbf   : > { %v695_v36 = vpop.f32.mrf.mxu1  ;;  %v734_v39 = vpop.f32.mrf.mxu2  ;;  %v669_v45 = vadd.f32 %v668_v42, %v634_v43 }
  0xc0   : > { %v696_v38 = vadd.f32 %v695_v36, %v664_v35 }
  0xc2   : > { %v735_v41 = vadd.f32 %v734_v39, %v696_v38  ;;  %v1056_v47 = vpop.eup %1055 }
  0xc3   : > { %v778_v52 = vadd.f32 1.0, %v1056_v47 }
  0xc4   : > { %v764_v44 = vadd.f32 %v763_v40, %v735_v41 }
  0xc5   : > { %1057 = vrcp.f32 %v778_v52  ;;  %vm785_vm4 = vweird.f32 %v778_v52  ;;  %v791_v8 = vand.u32 2147483648, %v778_v52  ;;  %v789_v10 = vand.u32 2147483647, %v778_v52 }
  0xc6   : > { %771 = vst [vmem:[%s288_s12 + $0x8] sm:$0xff] %v764_v44  ;;  %v767_v50 = vpop.f32.mrf.mxu3 }
  0xc7   : > { %v701_v46 = vpop.f32.mrf.mxu1  ;;  %v738_v49 = vpop.f32.mrf.mxu2  ;;  %v792_v13 = vor.u32 1.1754944e-38, %v791_v8  ;;  %vm790_vm10 = vcmp.eq.f32.partialorder %v789_v10, 8.507059e+37 }
  0xc8   : > { %v702_v48 = vadd.f32 %v701_v46, %v669_v45 }
  0xca   : > { %v739_v51 = vadd.f32 %v738_v49, %v702_v48 }
  0xcb   : > { %v1058_v56 = vpop.eup %1057 }
  0xcc   : > { %v768_v53 = vadd.f32 %v767_v50, %v739_v51  ;;  %v781_v60 = vmul.f32 %v1058_v56, %v778_v52  ;;  %vm786_vm2 = vweird.f32 %v1058_v56 }
  0xcd   : > { %vm1279_vm5 = vmor %vm785_vm4, %vm786_vm2 }
  0xce   : > { %v1023_v54 = vmul.f32 -1.442695, %v768_v53  ;;  %820 = vst [vmem:[#allocation1 + $0x9] sm:$0xff] %v768_v53  ;;  %v782_v61 = vsub.f32 1.0, %v781_v60 }
  0xd0   : > { %1059 = vpow2.f32 %v1023_v54  ;;  %v783_v63 = vmul.f32 %v1058_v56, %v782_v61 }
  0xd2   : > { %v784_v3 = vadd.f32 %v1058_v56, %v783_v63 }
  0xd4   : > { %v788_v12 = vsel %vm1279_vm5, %v1058_v56, %v784_v3 }
  0xd5   : > { %v822_v57 = vld [vmem:[#allocation1 + $0x3] ss:$9 sm:$0xff]  ;;  %v793_v17 = vsel %vm790_vm10, %v792_v13, %v788_v12 }
  0xd6   : > { %v1060_v58 = vpop.eup %1059  ;;  %828 = vst.msk [vmem:[%s307_s16] sm:$0x3] %vm826_vm1, %v822_v57 }
  0xd7   : > { %v779_v59 = vadd.f32 1.0, %v1060_v58 }
  0xd9   : > { %1061 = vrcp.f32 %v779_v59  ;;  %v806_v2 = vand.u32 2147483648, %v779_v59  ;;  %v804_v5 = vand.u32 2147483647, %v779_v59  ;;  %vm800_vm6 = vweird.f32 %v779_v59 }
  0xdb   : > { %v807_v11 = vor.u32 1.1754944e-38, %v806_v2  ;;  %vm805_vm8 = vcmp.eq.f32.partialorder %v804_v5, 8.507059e+37 }
  0xdf   : > { %v1062_v62 = vpop.eup %1061 }
  0xe0   : > { %v796_v0 = vmul.f32 %v1062_v62, %v779_v59  ;;  %vm801_vm3 = vweird.f32 %v1062_v62 }
  0xe1   : > { %vm802_vm7 = vmor %vm800_vm6, %vm801_vm3 }
  0xe2   : > { %v797_v1 = vsub.f32 1.0, %v796_v0 }
  0xe4   : > { %v798_v4 = vmul.f32 %v1062_v62, %v797_v1 }
  0xe6   : > { %v799_v6 = vadd.f32 %v1062_v62, %v798_v4 }
  0xe8   : > { %v803_v14 = vsel %vm802_vm7, %v1062_v62, %v799_v6 }
  0xe9   : > { %v808_v15 = vsel %vm805_vm8, %v807_v11, %v803_v14 }
  0xea   : > { %v812_v16 = vrot.slane %v808_v15, 4 }
  0xec   : > { %v814_v7 = vsel %vm813_vm9, %v793_v17, %v812_v16 }
  0xed   : > { %816 = vst [vmem:[%s298_s24] sm:$0x77] %v814_v7 }
  0xee PF: > { %s16_s20 = sadd.s32 1, %s1085_s20   ;;  %s1306_s18 = smov %s1081_s19 }
  0xef   : > { %p13_p5 = scmp.ge.s32.totalorder %s16_s20, 4   ;;  %s1307_s19 = smov %s1309_s21 }
  0xf1   :  { %15 = sbr.rel (!%p13_p5) target bundleno = 2 (0x2), region = 87 }

</bundles_post_ra>
